<compile_context>
chip_gen: v7x
topology: tpu7x:2x2x1
jax: 0.10.0
libtpu: 0.0.40
codegen_flags: <defaults>
</compile_context>

<pallas_src>
from functools import partial

import jax
import jax.numpy as jnp
import numpy as np
from jax.experimental import pallas as pl
from jax.experimental.pallas import tpu as pltpu


# ------------------------------- Pallas kernel -------------------------------

def fused_cnn1d_kernel(x_ref, w1e_ref, w1o_ref, b1_ref, w2e_ref, w2o_ref, b2_ref,
                       wfc1_ref, bfc1_ref, wfc2_ref, bfc2_ref, o_ref):
    """Fused CNN1D forward for one batch tile.

    x_ref:    (TB, L)          input rows, length on the lane axis (Cin == 1)
    w1e/w1o:  (L, C1*L/2)      conv1 evaluated at even/odd pool positions
    b1_ref:   (1, C1*L/2)      conv1 bias broadcast row
    w2e/w2o:  (C1*L/2, C2*L/4) conv2 evaluated at even/odd pool positions
    b2_ref:   (1, C2*L/4)
    wfc1_ref: (C2*L/4, H)      original fc1 weights (flatten order matches)
    bfc1_ref: (1, H)
    wfc2_ref: (H, 128)         fc2 weights zero-padded to a lane-dense output
    bfc2_ref: (1, 128)
    o_ref:    (TB, 128)
    """
    f32 = jnp.float32
    x = x_ref[...].astype(f32)

    # conv1 + bias + ReLU at both phases of each pool window, then MaxPool1d(2).
    # (ReLU then max == max then ReLU, so pooling commutes with the ReLU.)
    y1e = jnp.maximum(jnp.dot(x, w1e_ref[...], preferred_element_type=f32)
                      + b1_ref[...], 0.0)
    y1o = jnp.maximum(jnp.dot(x, w1o_ref[...], preferred_element_type=f32)
                      + b1_ref[...], 0.0)
    p1 = jnp.maximum(y1e, y1o)                    # (TB, C1*L/2), channel-major

    # conv2 + bias + ReLU + MaxPool1d(2), same two-phase trick.
    y2e = jnp.maximum(jnp.dot(p1, w2e_ref[...], preferred_element_type=f32)
                      + b2_ref[...], 0.0)
    y2o = jnp.maximum(jnp.dot(p1, w2o_ref[...], preferred_element_type=f32)
                      + b2_ref[...], 0.0)
    p2 = jnp.maximum(y2e, y2o)                    # (TB, C2*L/4) == torch Flatten(x)

    # fc1 + ReLU, fc2 (output padded to 128 lanes for a dense store).
    h = jnp.maximum(jnp.dot(p2, wfc1_ref[...], preferred_element_type=f32)
                    + bfc1_ref[...], 0.0)
    out = jnp.dot(h, wfc2_ref[...], preferred_element_type=f32) + bfc2_ref[...]
    o_ref[...] = out.astype(o_ref.dtype)


# -------------------------- one-time parameter prep --------------------------

def prepare_cnn1d_params(conv_params, fc_params, input_size):
    """Fold conv+pool structure into dense phase matrices (done once, not per call).

    conv_params: [(w1, b1), (w2, b2)] with torch layouts (Cout, Cin, 5), (Cout,)
    fc_params:   (wfc1, bfc1, wfc2, bfc2) with Linear weights stored as (in, out).
    """
    (w1, b1), (w2, b2) = conv_params
    wfc1, bfc1, wfc2, bfc2 = fc_params

    L = input_size
    assert L % 4 == 0
    C1, C2 = w1.shape[0], w2.shape[0]
    Lp, Lq = L // 2, L // 4
    H, O = wfc1.shape[1], wfc2.shape[1]
    O_PAD = 128                                   # lane-dense output width
    f32 = jnp.float32

    def conv_pool_phase_mat(w, l_in, l_out, phase):
        # w: (Cout, Cin, K) torch Conv1d weight (padding = K//2).
        # Builds M so that (packed_in @ M)[:, co*l_out + j] equals the conv
        # output of channel co at position 2*j + phase (the `phase`-th element
        # of pool window j), where packed_in lane ci*l_in + li holds input
        # channel ci at position li.  Out-of-range taps hit zero rows == the
        # Conv1d zero padding.
        cout, cin, k_sz = w.shape
        rows, cols, co_i, ci_i, k_i = [], [], [], [], []
        for co in range(cout):
            for ci in range(cin):
                for j in range(l_out):
                    for k in range(k_sz):
                        li = 2 * j + phase + k - (k_sz // 2)
                        if 0 <= li < l_in:
                            rows.append(ci * l_in + li)
                            cols.append(co * l_out + j)
                            co_i.append(co)
                            ci_i.append(ci)
                            k_i.append(k)
        vals = w[np.array(co_i), np.array(ci_i), np.array(k_i)].astype(f32)
        mat = jnp.zeros((cin * l_in, cout * l_out), f32)
        return mat.at[np.array(rows), np.array(cols)].set(vals)

    params = dict(
        w1e=conv_pool_phase_mat(w1, L, Lp, 0),
        w1o=conv_pool_phase_mat(w1, L, Lp, 1),
        b1v=jnp.repeat(b1.astype(f32), Lp).reshape(1, C1 * Lp),
        w2e=conv_pool_phase_mat(w2, Lp, Lq, 0),
        w2o=conv_pool_phase_mat(w2, Lp, Lq, 1),
        b2v=jnp.repeat(b2.astype(f32), Lq).reshape(1, C2 * Lq),
        wfc1=wfc1.astype(f32),
        bfc1=bfc1.astype(f32).reshape(1, H),
        wfc2=jnp.zeros((H, O_PAD), f32).at[:, :O].set(wfc2.astype(f32)),
        bfc2=jnp.zeros((1, O_PAD), f32).at[0, :O].set(bfc2.astype(f32)),
    )
    return params


# -------------------------------- JAX wrapper --------------------------------

def _round_up(n, m):
    return ((n + m - 1) // m) * m


def _pick_batch_tile(batch):
    # Big tiles amortize the ~0.35us/grid-step overhead; 512 rows keeps the x
    # tile at 64 KiB and the output tile at 256 KiB (far below VMEM on
    # v5e/v6e/v7x).  Keep >= 2 grid steps whenever the batch allows it so the
    # "parallel" axis can be split across v7x's two TensorCores.
    if batch >= 1024:
        return 512
    if batch > 8:
        return _round_up(pl.cdiv(batch, 2), 8)    # two grid steps
    return 8                                      # single tiny step


@partial(jax.jit, static_argnames=("output_size",))
def cnn1d_forward(x_ncl, params, *, output_size):
    """x_ncl: (B, 1, L) — same NCL convention as the PyTorch module."""
    B, cin0, L = x_ncl.shape
    assert cin0 == 1
    x2 = x_ncl[:, 0, :].astype(jnp.float32)       # (B, L): length on the lanes

    o_pad = params["wfc2"].shape[1]
    tb = _pick_batch_tile(B)
    grid_n = pl.cdiv(B, tb)
    b_pad = grid_n * tb
    if b_pad != B:
        x2 = jnp.pad(x2, ((0, b_pad - B), (0, 0)))

    vmem = pl.BlockSpec(memory_space=pltpu.MemorySpace.VMEM)
    out = pl.pallas_call(
        fused_cnn1d_kernel,
        out_shape=jax.ShapeDtypeStruct((b_pad, o_pad), jnp.float32),
        grid=(grid_n,),
        in_specs=[pl.BlockSpec((tb, L), lambda i: (i, 0))] + [vmem] * 10,
        out_specs=pl.BlockSpec((tb, o_pad), lambda i: (i, 0)),
        compiler_params=pltpu.CompilerParams(
            dimension_semantics=("parallel",)),
    )(x2,
      params["w1e"], params["w1o"], params["b1v"],
      params["w2e"], params["w2o"], params["b2v"],
      params["wfc1"], params["bfc1"], params["wfc2"], params["bfc2"])

    return out[:B, :output_size]


# --------------------------- pure-JAX reference ------------------------------

_HI = jax.lax.Precision.HIGHEST


def _reference_forward(x_ncl, conv_params, fc_params):
    h = jnp.transpose(x_ncl, (0, 2, 1)).astype(jnp.float32)    # (B, L, Cin)
    for (w, b) in conv_params:                                 # (Cout, Cin, 5), (Cout,)
        Bb, L, _ = h.shape
        Cout = w.shape[0]
        xp = jnp.pad(h, ((0, 0), (2, 2), (0, 0)))
        acc = sum(jnp.einsum('blc,oc->blo', xp[:, k:k + L, :], w[:, :, k],
                             precision=_HI)
                  for k in range(5)) + b[None, None, :]
        acc = jnp.maximum(acc, 0.0)
        h = jnp.max(acc.reshape(Bb, L // 2, 2, Cout), axis=2)
    flat = jnp.transpose(h, (0, 2, 1)).reshape(h.shape[0], -1)  # torch Flatten order
    w1, b1, w2, b2 = fc_params
    hid = jnp.maximum(jnp.dot(flat, w1, precision=_HI) + b1, 0.0)
    return jnp.dot(hid, w2, precision=_HI) + b2


# ------------------------------------ main ------------------------------------

if __name__ == "__main__":
    B, L = 2, 32                 # batch, input_size (power-spectrum length)
    NUM_CHANNELS = 4             # num_channels
    FC_SIZE = 32                 # fc_size (int branch)
    OUTPUT_SIZE = 2              # output_size (e.g. Teff + logg)
    NUM_CONV_LAYERS = 2

    key = jax.random.PRNGKey(0)
    keys = jax.random.split(key, 12)

    x = jax.random.normal(keys[0], (B, 1, L), dtype=jnp.float32)   # NCL input

    # Deterministic synthetic parameters (torch layouts):
    #   Conv1d weight (Cout, Cin, 5), bias (Cout,)
    #   Linear weight stored transposed as (in, out), bias (out,)
    conv_params = []
    in_ch = 1
    for i in range(NUM_CONV_LAYERS):
        w = jax.random.normal(keys[1 + 2 * i], (NUM_CHANNELS, in_ch, 5),
                              dtype=jnp.float32) * 0.1
        b = jax.random.normal(keys[2 + 2 * i], (NUM_CHANNELS,),
                              dtype=jnp.float32) * 0.1
        conv_params.append((w, b))
        in_ch = NUM_CHANNELS

    output_dim = NUM_CHANNELS * (L // (2 ** NUM_CONV_LAYERS))       # = 32
    w_fc1 = jax.random.normal(keys[8], (output_dim, FC_SIZE),
                              dtype=jnp.float32) * 0.1
    b_fc1 = jax.random.normal(keys[9], (FC_SIZE,), dtype=jnp.float32) * 0.1
    w_fc2 = jax.random.normal(keys[10], (FC_SIZE, OUTPUT_SIZE),
                              dtype=jnp.float32) * 0.1
    b_fc2 = jax.random.normal(keys[11], (OUTPUT_SIZE,),
                              dtype=jnp.float32) * 0.1
    fc_params = (w_fc1, b_fc1, w_fc2, b_fc2)

    # One-time parameter preparation (phase matrices, bias rows, fc2 padding).
    params = prepare_cnn1d_params(conv_params, fc_params, L)

    out = cnn1d_forward(x, params, output_size=OUTPUT_SIZE)
    jax.block_until_ready(out)

    ref = _reference_forward(x, conv_params, fc_params)
    np.testing.assert_allclose(np.asarray(out), np.asarray(ref),
                               rtol=1e-4, atol=2e-5)
    assert out.shape == (B, OUTPUT_SIZE)

    # Also exercise the padded, multi-step grid path (2 "parallel" steps).
    B2 = 300
    x_big = jax.random.normal(jax.random.PRNGKey(1), (B2, 1, L),
                              dtype=jnp.float32)
    out_big = cnn1d_forward(x_big, params, output_size=OUTPUT_SIZE)
    jax.block_until_ready(out_big)
    ref_big = _reference_forward(x_big, conv_params, fc_params)
    np.testing.assert_allclose(np.asarray(out_big), np.asarray(ref_big),
                               rtol=1e-4, atol=2e-5)
    assert out_big.shape == (B2, OUTPUT_SIZE)

    print("KERNEL_OK")
</pallas_src>

<mosaic_0001>
module attributes {stable_mosaic.version = 11 : i64} {
  func.func @fused_cnn1d_kernel(%arg0: i32, %arg1: memref<8x32xf32, #tpu.memory_space<vmem>>, %arg2: memref<32x64xf32, #tpu.memory_space<vmem>>, %arg3: memref<32x64xf32, #tpu.memory_space<vmem>>, %arg4: memref<1x64xf32, #tpu.memory_space<vmem>>, %arg5: memref<64x32xf32, #tpu.memory_space<vmem>>, %arg6: memref<64x32xf32, #tpu.memory_space<vmem>>, %arg7: memref<1x32xf32, #tpu.memory_space<vmem>>, %arg8: memref<32x32xf32, #tpu.memory_space<vmem>>, %arg9: memref<1x32xf32, #tpu.memory_space<vmem>>, %arg10: memref<32x128xf32, #tpu.memory_space<vmem>>, %arg11: memref<1x128xf32, #tpu.memory_space<vmem>>, %arg12: memref<8x128xf32, #tpu.memory_space<vmem>>) attributes {dimension_semantics = [#tpu.dimension_semantics<parallel>], iteration_bounds = array<i64: 1>, scalar_prefetch = 0 : i64, scratch_operands = 0 : i64, tpu.core_type = #tpu.core_type<tc>, window_params = [{transform_indices = @transform_0, window_bounds = array<i64: 8, 32>}, {pipeline_mode = #tpu.pipeline_mode<synchronous>, transform_indices = @transform_1, window_bounds = array<i64: 32, 64>}, {pipeline_mode = #tpu.pipeline_mode<synchronous>, transform_indices = @transform_2, window_bounds = array<i64: 32, 64>}, {pipeline_mode = #tpu.pipeline_mode<synchronous>, transform_indices = @transform_3, window_bounds = array<i64: 1, 64>}, {pipeline_mode = #tpu.pipeline_mode<synchronous>, transform_indices = @transform_4, window_bounds = array<i64: 64, 32>}, {pipeline_mode = #tpu.pipeline_mode<synchronous>, transform_indices = @transform_5, window_bounds = array<i64: 64, 32>}, {pipeline_mode = #tpu.pipeline_mode<synchronous>, transform_indices = @transform_6, window_bounds = array<i64: 1, 32>}, {pipeline_mode = #tpu.pipeline_mode<synchronous>, transform_indices = @transform_7, window_bounds = array<i64: 32, 32>}, {pipeline_mode = #tpu.pipeline_mode<synchronous>, transform_indices = @transform_8, window_bounds = array<i64: 1, 32>}, {pipeline_mode = #tpu.pipeline_mode<synchronous>, transform_indices = @transform_9, window_bounds = array<i64: 32, 128>}, {pipeline_mode = #tpu.pipeline_mode<synchronous>, transform_indices = @transform_10, window_bounds = array<i64: 1, 128>}, {transform_indices = @transform_11, window_bounds = array<i64: 8, 128>}]} {
    %c0 = arith.constant 0 : index
    %c0_0 = arith.constant 0 : index
    %0 = vector.load %arg1[%c0, %c0_0] : memref<8x32xf32, #tpu.memory_space<vmem>>, vector<8x32xf32>
    %c0_1 = arith.constant 0 : index
    %c0_2 = arith.constant 0 : index
    %1 = vector.load %arg2[%c0_1, %c0_2] : memref<32x64xf32, #tpu.memory_space<vmem>>, vector<32x64xf32>
    %cst = arith.constant dense<0.000000e+00> : vector<8x64xf32>
    %2 = tpu.matmul %0, %1, %cst {dimension_numbers = #tpu.dot_dimension_numbers<[1], [0], [0], [1], [0, 0, 1, 1], [], []>} : vector<8x32xf32>, vector<32x64xf32>, vector<8x64xf32> -> vector<8x64xf32>
    %c0_3 = arith.constant 0 : index
    %c0_4 = arith.constant 0 : index
    %3 = vector.load %arg4[%c0_3, %c0_4] : memref<1x64xf32, #tpu.memory_space<vmem>>, vector<1x64xf32>
    %4 = vector.broadcast %3 : vector<1x64xf32> to vector<8x64xf32>
    %5 = arith.addf %2, %4 : vector<8x64xf32>
    %cst_5 = arith.constant 0.000000e+00 : f32
    %6 = vector.broadcast %cst_5 : f32 to vector<8x64xf32>
    %7 = arith.maximumf %5, %6 : vector<8x64xf32>
    %c0_6 = arith.constant 0 : index
    %c0_7 = arith.constant 0 : index
    %8 = vector.load %arg3[%c0_6, %c0_7] : memref<32x64xf32, #tpu.memory_space<vmem>>, vector<32x64xf32>
    %cst_8 = arith.constant dense<0.000000e+00> : vector<8x64xf32>
    %9 = tpu.matmul %0, %8, %cst_8 {dimension_numbers = #tpu.dot_dimension_numbers<[1], [0], [0], [1], [0, 0, 1, 1], [], []>} : vector<8x32xf32>, vector<32x64xf32>, vector<8x64xf32> -> vector<8x64xf32>
    %c0_9 = arith.constant 0 : index
    %c0_10 = arith.constant 0 : index
    %10 = vector.load %arg4[%c0_9, %c0_10] : memref<1x64xf32, #tpu.memory_space<vmem>>, vector<1x64xf32>
    %11 = vector.broadcast %10 : vector<1x64xf32> to vector<8x64xf32>
    %12 = arith.addf %9, %11 : vector<8x64xf32>
    %cst_11 = arith.constant 0.000000e+00 : f32
    %13 = vector.broadcast %cst_11 : f32 to vector<8x64xf32>
    %14 = arith.maximumf %12, %13 : vector<8x64xf32>
    %15 = arith.maximumf %7, %14 : vector<8x64xf32>
    %c0_12 = arith.constant 0 : index
    %c0_13 = arith.constant 0 : index
    %16 = vector.load %arg5[%c0_12, %c0_13] : memref<64x32xf32, #tpu.memory_space<vmem>>, vector<64x32xf32>
    %cst_14 = arith.constant dense<0.000000e+00> : vector<8x32xf32>
    %17 = tpu.matmul %15, %16, %cst_14 {dimension_numbers = #tpu.dot_dimension_numbers<[1], [0], [0], [1], [0, 0, 1, 1], [], []>} : vector<8x64xf32>, vector<64x32xf32>, vector<8x32xf32> -> vector<8x32xf32>
    %c0_15 = arith.constant 0 : index
    %c0_16 = arith.constant 0 : index
    %18 = vector.load %arg7[%c0_15, %c0_16] : memref<1x32xf32, #tpu.memory_space<vmem>>, vector<1x32xf32>
    %19 = vector.broadcast %18 : vector<1x32xf32> to vector<8x32xf32>
    %20 = arith.addf %17, %19 : vector<8x32xf32>
    %cst_17 = arith.constant 0.000000e+00 : f32
    %21 = vector.broadcast %cst_17 : f32 to vector<8x32xf32>
    %22 = arith.maximumf %20, %21 : vector<8x32xf32>
    %c0_18 = arith.constant 0 : index
    %c0_19 = arith.constant 0 : index
    %23 = vector.load %arg6[%c0_18, %c0_19] : memref<64x32xf32, #tpu.memory_space<vmem>>, vector<64x32xf32>
    %cst_20 = arith.constant dense<0.000000e+00> : vector<8x32xf32>
    %24 = tpu.matmul %15, %23, %cst_20 {dimension_numbers = #tpu.dot_dimension_numbers<[1], [0], [0], [1], [0, 0, 1, 1], [], []>} : vector<8x64xf32>, vector<64x32xf32>, vector<8x32xf32> -> vector<8x32xf32>
    %c0_21 = arith.constant 0 : index
    %c0_22 = arith.constant 0 : index
    %25 = vector.load %arg7[%c0_21, %c0_22] : memref<1x32xf32, #tpu.memory_space<vmem>>, vector<1x32xf32>
    %26 = vector.broadcast %25 : vector<1x32xf32> to vector<8x32xf32>
    %27 = arith.addf %24, %26 : vector<8x32xf32>
    %cst_23 = arith.constant 0.000000e+00 : f32
    %28 = vector.broadcast %cst_23 : f32 to vector<8x32xf32>
    %29 = arith.maximumf %27, %28 : vector<8x32xf32>
    %30 = arith.maximumf %22, %29 : vector<8x32xf32>
    %c0_24 = arith.constant 0 : index
    %c0_25 = arith.constant 0 : index
    %31 = vector.load %arg8[%c0_24, %c0_25] : memref<32x32xf32, #tpu.memory_space<vmem>>, vector<32x32xf32>
    %cst_26 = arith.constant dense<0.000000e+00> : vector<8x32xf32>
    %32 = tpu.matmul %30, %31, %cst_26 {dimension_numbers = #tpu.dot_dimension_numbers<[1], [0], [0], [1], [0, 0, 1, 1], [], []>} : vector<8x32xf32>, vector<32x32xf32>, vector<8x32xf32> -> vector<8x32xf32>
    %c0_27 = arith.constant 0 : index
    %c0_28 = arith.constant 0 : index
    %33 = vector.load %arg9[%c0_27, %c0_28] : memref<1x32xf32, #tpu.memory_space<vmem>>, vector<1x32xf32>
    %34 = vector.broadcast %33 : vector<1x32xf32> to vector<8x32xf32>
    %35 = arith.addf %32, %34 : vector<8x32xf32>
    %cst_29 = arith.constant 0.000000e+00 : f32
    %36 = vector.broadcast %cst_29 : f32 to vector<8x32xf32>
    %37 = arith.maximumf %35, %36 : vector<8x32xf32>
    %c0_30 = arith.constant 0 : index
    %c0_31 = arith.constant 0 : index
    %38 = vector.load %arg10[%c0_30, %c0_31] : memref<32x128xf32, #tpu.memory_space<vmem>>, vector<32x128xf32>
    %cst_32 = arith.constant dense<0.000000e+00> : vector<8x128xf32>
    %39 = tpu.matmul %37, %38, %cst_32 {dimension_numbers = #tpu.dot_dimension_numbers<[1], [0], [0], [1], [0, 0, 1, 1], [], []>} : vector<8x32xf32>, vector<32x128xf32>, vector<8x128xf32> -> vector<8x128xf32>
    %c0_33 = arith.constant 0 : index
    %c0_34 = arith.constant 0 : index
    %40 = vector.load %arg11[%c0_33, %c0_34] : memref<1x128xf32, #tpu.memory_space<vmem>>, vector<1x128xf32>
    %41 = vector.broadcast %40 : vector<1x128xf32> to vector<8x128xf32>
    %42 = arith.addf %39, %41 : vector<8x128xf32>
    %c0_35 = arith.constant 0 : index
    %c0_36 = arith.constant 0 : index
    %43 = vector.load %arg12[%c0_35, %c0_36] : memref<8x128xf32, #tpu.memory_space<vmem>>, vector<8x128xf32>
    tpu.vector_store %arg12[%c0_35, %c0_36], %42 {strides = array<i32>} : memref<8x128xf32, #tpu.memory_space<vmem>>, vector<8x128xf32>,
    return
  }
  func.func @transform_0(%arg0: i32) -> (i32, i32) {
    %c0_i32 = arith.constant 0 : i32
    %c0_i32_0 = arith.constant 0 : i32
    return %arg0, %c0_i32 : i32, i32
  }
  func.func @transform_1(%arg0: i32) -> (i32, i32) {
    %c0_i32 = arith.constant 0 : i32
    %c0_i32_0 = arith.constant 0 : i32
    %c0_i32_1 = arith.constant 0 : i32
    return %c0_i32, %c0_i32_0 : i32, i32
  }
  func.func @transform_2(%arg0: i32) -> (i32, i32) {
    %c0_i32 = arith.constant 0 : i32
    %c0_i32_0 = arith.constant 0 : i32
    %c0_i32_1 = arith.constant 0 : i32
    return %c0_i32, %c0_i32_0 : i32, i32
  }
  func.func @transform_3(%arg0: i32) -> (i32, i32) {
    %c0_i32 = arith.constant 0 : i32
    %c0_i32_0 = arith.constant 0 : i32
    %c0_i32_1 = arith.constant 0 : i32
    return %c0_i32, %c0_i32_0 : i32, i32
  }
  func.func @transform_4(%arg0: i32) -> (i32, i32) {
    %c0_i32 = arith.constant 0 : i32
    %c0_i32_0 = arith.constant 0 : i32
    %c0_i32_1 = arith.constant 0 : i32
    return %c0_i32, %c0_i32_0 : i32, i32
  }
  func.func @transform_5(%arg0: i32) -> (i32, i32) {
    %c0_i32 = arith.constant 0 : i32
    %c0_i32_0 = arith.constant 0 : i32
    %c0_i32_1 = arith.constant 0 : i32
    return %c0_i32, %c0_i32_0 : i32, i32
  }
  func.func @transform_6(%arg0: i32) -> (i32, i32) {
    %c0_i32 = arith.constant 0 : i32
    %c0_i32_0 = arith.constant 0 : i32
    %c0_i32_1 = arith.constant 0 : i32
    return %c0_i32, %c0_i32_0 : i32, i32
  }
  func.func @transform_7(%arg0: i32) -> (i32, i32) {
    %c0_i32 = arith.constant 0 : i32
    %c0_i32_0 = arith.constant 0 : i32
    %c0_i32_1 = arith.constant 0 : i32
    return %c0_i32, %c0_i32_0 : i32, i32
  }
  func.func @transform_8(%arg0: i32) -> (i32, i32) {
    %c0_i32 = arith.constant 0 : i32
    %c0_i32_0 = arith.constant 0 : i32
    %c0_i32_1 = arith.constant 0 : i32
    return %c0_i32, %c0_i32_0 : i32, i32
  }
  func.func @transform_9(%arg0: i32) -> (i32, i32) {
    %c0_i32 = arith.constant 0 : i32
    %c0_i32_0 = arith.constant 0 : i32
    %c0_i32_1 = arith.constant 0 : i32
    return %c0_i32, %c0_i32_0 : i32, i32
  }
  func.func @transform_10(%arg0: i32) -> (i32, i32) {
    %c0_i32 = arith.constant 0 : i32
    %c0_i32_0 = arith.constant 0 : i32
    %c0_i32_1 = arith.constant 0 : i32
    return %c0_i32, %c0_i32_0 : i32, i32
  }
  func.func @transform_11(%arg0: i32) -> (i32, i32) {
    %c0_i32 = arith.constant 0 : i32
    %c0_i32_0 = arith.constant 0 : i32
    return %arg0, %c0_i32 : i32, i32
  }
}

</mosaic_0001>

<bundles_post_ra>
// kernel: cnn1d_forward.1
= control target key start
LH: loop header
LB: loop body
LE: loop exit
PB: predicated region body
PF: predicated region fallthrough
CT: control target
= control target key end

     0   :  { %v726_v0 = vmov 0.0|0.0   ;;  %vm727_vm0 = vmmov 0   ;;  %v728_v8 = vmov 0.0   ;;  %vm50_vm1 = vcmask 261120   ;;  %s935_s1 = inlined_call_operand.vmem [shape: f32[32,64], index: 1, kind: input, shape index: {}]   ;;  %s936_s2 = inlined_call_operand.vmem [shape: f32[32,64], index: 2, kind: input, shape index: {}]   ;;  %s937_s4 = inlined_call_operand.vmem [shape: f32[64,32], index: 4, kind: input, shape index: {}]   ;;  %s938_s5 = inlined_call_operand.vmem [shape: f32[64,32], index: 5, kind: input, shape index: {}]   ;;  %s939_s0 = inlined_call_operand.vmem [shape: f32[8,32], index: 0, kind: input, shape index: {}]   ;;  %s940_s3 = inlined_call_operand.vmem [shape: f32[1,64], index: 3, kind: input, shape index: {}]   ;;  %s941_s7 = inlined_call_operand.vmem [shape: f32[32,32], index: 7, kind: input, shape index: {}]   ;;  %s942_s9 = inlined_call_operand.vmem [shape: f32[32,128], index: 9, kind: input, shape index: {}]   ;;  %s943_s6 = inlined_call_operand.vmem [shape: f32[1,32], index: 6, kind: input, shape index: {}]   ;;  %s944_s8 = inlined_call_operand.vmem [shape: f32[1,32], index: 8, kind: input, shape index: {}]   ;;  %s945_s10 = inlined_call_operand.vmem [shape: f32[1,128], index: 10, kind: input, shape index: {}]   ;;  %s946_s11 = inlined_call_operand.vmem [shape: f32[8,128], index: 11, kind: output, shape index: {}]  }
   0x1   :  { %675 = vmatprep.subr.bf16.mxu0 %v726_v0  ;;  %681 = vmatprep.subr.bf16.mxu1 %v726_v0  ;;  %v39_v1 = vld [vmem:[%s935_s1] sm:$0xff]  ;;  %v40_v2 = vld [vmem:[%s935_s1 + $0x8] sm:$0xff]  ;;  %v41_v6 = vld [vmem:[%s935_s1 + $0x10] sm:$0xff]  ;;  %vm216_vm2 = vcmask 523264  }
   0x2   :  { %v125_v3 = vld [vmem:[%s936_s2] sm:$0xff]  ;;  %v676_v4 = vpack.c.bf16 %v40_v2, %v39_v1  ;;  %v126_v5 = vld [vmem:[%s936_s2 + $0x8] sm:$0xff]  ;;  %v42_v7 = vld [vmem:[%s935_s1 + $0x18] sm:$0xff]  ;;  %601 = vmatprep.mubr.msk.f32.mxu0 %vm727_vm0, %v728_v8  ;;  %612 = vmatprep.mubr.msk.f32.mxu1 %vm727_vm0, %v728_v8 }
   0x3   :  { %v682_v9 = vpack.c.bf16 %v126_v5, %v125_v3  ;;  %v127_v10 = vld [vmem:[%s936_s2 + $0x10] sm:$0xff]  ;;  %v128_v11 = vld [vmem:[%s936_s2 + $0x18] sm:$0xff]  ;;  %v679_v12 = vpack.c.bf16 %v42_v7, %v41_v6  ;;  %v201_v14 = vld [vmem:[%s937_s4] sm:$0xff] }
   0x4   :  { %677 = vmatpush3.bf16.msra.mxu0 %v676_v4  ;;  %v685_v13 = vpack.c.bf16 %v128_v11, %v127_v10  ;;  %v202_v15 = vld [vmem:[%s937_s4 + $0x8] sm:$0xff]  ;;  %v291_v16 = vld [vmem:[%s938_s5] sm:$0xff]  ;;  %v203_v21 = vld [vmem:[%s937_s4 + $0x10] sm:$0xff] }
   0x5   :  { %683 = vmatpush3.bf16.msra.mxu1 %v682_v9  ;;  %678 = vmatprep.subr.bf16.mxu0 %v726_v0  ;;  %v292_v17 = vld [vmem:[%s938_s5 + $0x8] sm:$0xff]  ;;  %v38_v18 = vld [vmem:[%s939_s0] sm:$0xff]  ;;  %v688_v19 = vpack.c.bf16 %v202_v15, %v201_v14  ;;  %v204_v22 = vld [vmem:[%s937_s4 + $0x18] sm:$0xff] }
   0x6   :  { %684 = vmatprep.subr.bf16.mxu1 %v726_v0  ;;  %v700_v20 = vpack.c.bf16 %v292_v17, %v291_v16  ;;  %v293_v23 = vld [vmem:[%s938_s5 + $0x10] sm:$0xff]  ;;  %v294_v24 = vld [vmem:[%s938_s5 + $0x18] sm:$0xff]  ;;  %v691_v25 = vpack.c.bf16 %v204_v22, %v203_v21  ;;  %v205_v27 = vld [vmem:[%s937_s4 + $0x20] sm:$0xff] }
   0x7   :  { %v703_v26 = vpack.c.bf16 %v294_v24, %v293_v23  ;;  %v206_v28 = vld [vmem:[%s937_s4 + $0x28] sm:$0xff]  ;;  %v295_v29 = vld [vmem:[%s938_s5 + $0x20] sm:$0xff]  ;;  %v207_v33 = vld [vmem:[%s937_s4 + $0x30] sm:$0xff] }
   0x8   :  { %680 = vmatpush3.bf16.msra.mxu0 %v679_v12  ;;  %v694_v30 = vpack.c.bf16 %v206_v28, %v205_v27  ;;  %v296_v31 = vld [vmem:[%s938_s5 + $0x28] sm:$0xff]  ;;  %v208_v34 = vld [vmem:[%s937_s4 + $0x38] sm:$0xff]  ;;  %v297_v35 = vld [vmem:[%s938_s5 + $0x30] sm:$0xff] }
   0x9   :  { %686 = vmatpush3.bf16.msra.mxu1 %v685_v13  ;;  %687 = vmatprep.subr.bf16.mxu0 %v726_v0  ;;  %v706_v32 = vpack.c.bf16 %v296_v31, %v295_v29  ;;  %v697_v36 = vpack.c.bf16 %v208_v34, %v207_v33  ;;  %v298_v37 = vld [vmem:[%s938_s5 + $0x38] sm:$0xff]  ;;  %v545_v39 = vld [vmem:[%s940_s3] ss:$0 sm:$0xff]  ;;  %v372_v50 = vld [vmem:[%s941_s7 + $0x8] sm:$0xff] }
   0xa   :  { %699 = vmatprep.subr.bf16.mxu1 %v726_v0  ;;  %v709_v38 = vpack.c.bf16 %v298_v37, %v297_v35  ;;  %v371_v49 = vld [vmem:[%s941_s7] sm:$0xff]  ;;  %v373_v52 = vld [vmem:[%s941_s7 + $0x10] sm:$0xff]  ;;  %v374_v53 = vld [vmem:[%s941_s7 + $0x18] sm:$0xff] }
   0xb   :  { %602 = vmatmul.mubr.msk.f32.vlgmr.msra.gmra.mrb[0].mxu0 %vm50_vm1, %v38_v18  ;;  %v712_v51 = vpack.c.bf16 %v372_v50, %v371_v49  ;;  %v715_v54 = vpack.c.bf16 %v374_v53, %v373_v52  ;;  %v456_v55 = vld [vmem:[%s942_s9] sm:$0xff]  ;;  %v457_v56 = vld [vmem:[%s942_s9 + $0x8] sm:$0xff]  ;;  %v458_v5 = vld [vmem:[%s942_s9 + $0x10] sm:$0xff] }
   0xc   :  { %613 = vmatmul.mubr.msk.f32.vlgmr.msra.gmra.mrb[0].mxu1 %vm50_vm1, %v38_v18  ;;  %689 = vmatpush3.bf16.msra.mxu0 %v688_v19  ;;  %v718_v57 = vpack.c.bf16 %v457_v56, %v456_v55  ;;  %v548_v58 = vld [vmem:[%s943_s6] ss:$0 sm:$0xff] }
   0xd   :  { %701 = vmatpush3.bf16.msra.mxu1 %v700_v20  ;;  %690 = vmatprep.subr.bf16.mxu0 %v726_v0  ;;  %v551_v7 = vld [vmem:[%s944_s8] ss:$0 sm:$0xff] }
   0xe   :  { %702 = vmatprep.subr.bf16.mxu1 %v726_v0  ;;  %631 = vmatprep.mubr.msk.f32.mxu0 %vm727_vm0, %v728_v8  ;;  %v553_v12 = vld [vmem:[%s945_s10] ss:$0 sm:$0xff] }
   0xf   :  { %650 = vmatprep.mubr.msk.f32.mxu1 %vm727_vm0, %v728_v8 }
  0x10   :  { %692 = vmatpush3.bf16.msra.mxu0 %v691_v25 }
  0x11   :  { %704 = vmatpush3.bf16.msra.mxu1 %v703_v26  ;;  %693 = vmatprep.subr.bf16.mxu0 %v726_v0 }
  0x12   :  { %705 = vmatprep.subr.bf16.mxu1 %v726_v0 }
  0x14   :  { %695 = vmatpush3.bf16.msra.mxu0 %v694_v30 }
  0x15   :  { %707 = vmatpush3.bf16.msra.mxu1 %v706_v32  ;;  %696 = vmatprep.subr.bf16.mxu0 %v726_v0 }
  0x16   :  { %708 = vmatprep.subr.bf16.mxu1 %v726_v0 }
  0x18   :  { %698 = vmatpush3.bf16.msra.mxu0 %v697_v36 }
  0x19   :  { %710 = vmatpush3.bf16.msra.mxu1 %v709_v38  ;;  %711 = vmatprep.subr.bf16.mxu0 %v726_v0 }
  0x1a   :  { %717 = vmatprep.subr.bf16.mxu1 %v726_v0 }
  0xde   :  { %v120_v40 = vpop.f32.mrb[0].mxu0 }
  0xdf   :  { %v121_v41 = vadd.f32 %v545_v39, %v120_v40  ;;  %v195_v42 = vpop.f32.mrb[0].mxu1  ;;  %v603_v43 = vpop.f32.mrb[1].mxu0 }
  0xe0   :  { %v196_v44 = vadd.f32 %v545_v39, %v195_v42  ;;  %v614_v45 = vpop.f32.mrb[1].mxu1 }
  0xe1   :  { %v124_v46 = vmax.f32 %v121_v41, 0.0 }
  0xe2   :  { %v199_v47 = vmax.f32 %v196_v44, 0.0 }
  0xe4   :  { %v200_v48 = vmax.f32 %v124_v46, %v199_v47 }
  0xe6   :  { %632 = vmatmul.mubr.msk.f32.vlgmr.msra.gmra.mrb[2].mxu0 %vm216_vm2, %v200_v48  ;;  %651 = vmatmul.mubr.msk.f32.vlgmr.msra.gmra.mrb[2].mxu1 %vm216_vm2, %v200_v48 }
  0xe7   :  { %661 = vmatprep.mubr.msk.f32.mxu0 %vm727_vm0, %v728_v8  ;;  %672 = vmatprep.mubr.msk.f32.mxu1 %vm727_vm0, %v728_v8 }
  0xe8   :  { %713 = vmatpush3.bf16.msra.mxu0 %v712_v51  ;;  %719 = vmatpush3.bf16.msra.mxu1 %v718_v57 }
  0xe9   :  { %714 = vmatprep.subr.bf16.mxu0 %v726_v0  ;;  %720 = vmatprep.subr.bf16.mxu1 %v726_v0  ;;  %v459_v0 = vld [vmem:[%s942_s9 + $0x18] sm:$0xff] }
  0xea   :  { %v721_v6 = vpack.c.bf16 %v459_v0, %v458_v5 }
  0xec   :  { %716 = vmatpush3.bf16.msra.mxu0 %v715_v54  ;;  %722 = vmatpush3.bf16.msra.mxu1 %v721_v6 }
 0x1b9   :  { %v286_v59 = vpop.f32.mrb[2].mxu0  ;;  %v365_v60 = vpop.f32.mrb[2].mxu1 }
 0x1ba   :  { %v287_v61 = vadd.f32 %v548_v58, %v286_v59  ;;  %v366_v62 = vadd.f32 %v548_v58, %v365_v60  ;;  %v633_v63 = vpop.f32.mrb[3].mxu0  ;;  %v652_v1 = vpop.f32.mrb[3].mxu1 }
 0x1bc   :  { %v290_v2 = vmax.f32 %v287_v61, 0.0  ;;  %v369_v3 = vmax.f32 %v366_v62, 0.0 }
 0x1be   :  { %v370_v4 = vmax.f32 %v290_v2, %v369_v3 }
 0x1c0   :  { %662 = vmatmul.mubr.msk.f32.vlgmr.msra.gmra.mrb[4].mxu0 %vm50_vm1, %v370_v4 }
 0x293   :  { %v451_v8 = vpop.f32.mrb[4].mxu0 }
 0x294   :  { %v452_v9 = vadd.f32 %v551_v7, %v451_v8  ;;  %v663_v10 = vpop.f32.mrb[5].mxu0 }
 0x296   :  { %v455_v11 = vmax.f32 %v452_v9, 0.0 }
 0x298   :  { %673 = vmatmul.mubr.msk.f32.vlgmr.msra.gmra.mrb[4].mxu1 %vm50_vm1, %v455_v11 }
 0x36b   :  { %v536_v13 = vpop.f32.mrb[4].mxu1 }
 0x36c   :  { %v537_v14 = vadd.f32 %v553_v12, %v536_v13  ;;  %v674_v15 = vpop.f32.mrb[5].mxu1 }
 0x36e   :  { %540 = vst [vmem:[%s946_s11] sm:$0xff] %v537_v14 }

</bundles_post_ra>
